<compile_context>
chip_gen: v5e
topology: v5e:2x2
jax: 0.10.0
libtpu: 0.0.40
codegen_flags: <defaults>
</compile_context>

<pallas_src>
import functools

import numpy as np
import jax
import jax.numpy as jnp
from jax.experimental import pallas as pl
from jax.experimental.pallas import tpu as pltpu


_VMEM_LIMIT = 48 * 1024 * 1024          # safe on v5e/v6e (128 MiB) and v7x (64 MiB)
_ACT_DTYPE = jnp.bfloat16               # activation dtype between layers


def _round_up(x, m):
    return (x + m - 1) // m * m


def _cdiv(a, b):
    return -(-a // b)


# ----------------------------------------------------------------------------
# Pallas kernels
# ----------------------------------------------------------------------------

def _matmul_kernel(a_ref, b_ref, s_ref, c_ref, o_ref, acc_ref, *, relu):
    """Tiled bf16 matmul, f32 accumulation, fused scale/bias (+ optional ReLU)."""
    @pl.when(pl.program_id(2) == 0)
    def _():
        acc_ref[...] = jnp.zeros_like(acc_ref)

    acc_ref[...] += jnp.dot(a_ref[...], b_ref[...],
                            preferred_element_type=jnp.float32)

    @pl.when(pl.program_id(2) == pl.num_programs(2) - 1)
    def _():
        y = acc_ref[...] * s_ref[...] + c_ref[...]
        if relu:
            y = jnp.maximum(y, 0.0)
        o_ref[...] = y.astype(o_ref.dtype)


def _pool3x3_kernel(x_ref, o_ref, *, mode, th, wout, hvalid):
    """3x3 stride-1 window reduce over a resident padded slab.

    x_ref block: (Hp_pad, Wp, Cb) -- whole padded H, resident across h-blocks.
    o_ref block: (th, wout, Cb)   -- one block of output rows.
    mode: 'max' or 'avg' (avg divides by #valid elements, count_include_pad=False).
    """
    hb = pl.program_id(2)
    row0 = hb * th
    acc = None
    for di in range(3):
        rows = x_ref[pl.ds(row0 + di, th)]          # (th, Wp, Cb)
        for dj in range(3):
            w = rows[:, dj:dj + wout, :]
            if mode == 'max':
                acc = w if acc is None else jnp.maximum(acc, w)
            else:
                wf = w.astype(jnp.float32)
                acc = wf if acc is None else acc + wf
    if mode == 'max':
        o_ref[...] = acc.astype(o_ref.dtype)
    else:
        r = row0 + jax.lax.broadcasted_iota(jnp.int32, (th, wout, 1), 0)
        c = jax.lax.broadcasted_iota(jnp.int32, (th, wout, 1), 1)
        rc = (3.0 - (r == 0).astype(jnp.float32)
              - (r == hvalid - 1).astype(jnp.float32))
        cc = (3.0 - (c == 0).astype(jnp.float32)
              - (c == wout - 1).astype(jnp.float32))
        o_ref[...] = (acc / (rc * cc)).astype(o_ref.dtype)


def _gap_kernel(x_ref, o_ref, *, inv_hw):
    # x_ref: (N, HWp, tc) -> global average over the spatial axis (f32 sum).
    o_ref[...] = jnp.sum(x_ref[...].astype(jnp.float32), axis=1) * inv_hw


# ----------------------------------------------------------------------------
# Tile planning + memoized pallas_call builders
# ----------------------------------------------------------------------------

def _tile_plan(M, Kp, Np):
    """Pick matmul tiles; Kp/Np are already multiples of 128."""
    if M >= 4096:
        tm = 512
    elif M >= 1024:
        tm = 256
    else:
        tm = 128
    Mp = _round_up(M, tm)

    if Kp <= 2048:
        tk = Kp
    else:
        d = Kp // 128
        best = 1
        for cand in range(16, 0, -1):          # tk <= 2048, multiple of 128
            if d % cand == 0:
                best = cand
                break
        tk = best * 128

    if Np <= 512:
        tn = Np
    else:
        d = Np // 128
        best = 1
        for cand in range(4, 0, -1):           # tn <= 512, multiple of 128
            if d % cand == 0:
                best = cand
                break
        tn = best * 128

    # Late layers: M collapses to a single block; keep >=2 output-channel
    # blocks so both TensorCores (v7x megacore) get work.
    if Mp // tm == 1 and 256 <= Np <= 512:
        tn = 128
    return tm, Mp, tk, tn


@functools.lru_cache(maxsize=None)
def _matmul_call(Mp, Kp, Np, relu, tm, tn, tk, out_dtype_name):
    kernel = functools.partial(_matmul_kernel, relu=relu)
    return pl.pallas_call(
        kernel,
        out_shape=jax.ShapeDtypeStruct((Mp, Np), jnp.dtype(out_dtype_name)),
        grid_spec=pltpu.PrefetchScalarGridSpec(
            num_scalar_prefetch=0,
            grid=(Mp // tm, Np // tn, Kp // tk),
            in_specs=[
                pl.BlockSpec((tm, tk), lambda i, j, k: (i, k)),
                pl.BlockSpec((tk, tn), lambda i, j, k: (k, j)),
                pl.BlockSpec((1, tn), lambda i, j, k: (0, j)),
                pl.BlockSpec((1, tn), lambda i, j, k: (0, j)),
            ],
            out_specs=pl.BlockSpec((tm, tn), lambda i, j, k: (i, j)),
            scratch_shapes=[pltpu.VMEM((tm, tn), jnp.float32)],
        ),
        compiler_params=pltpu.CompilerParams(
            dimension_semantics=("parallel", "parallel", "arbitrary"),
            vmem_limit_bytes=_VMEM_LIMIT),
    )


@functools.lru_cache(maxsize=None)
def _pool_call(n, hp_pad, wpad, c, cb, th, n_hb, wout, hvalid, mode, dtype_name):
    kernel = functools.partial(_pool3x3_kernel, mode=mode, th=th, wout=wout,
                               hvalid=hvalid)
    hout_pad = n_hb * th
    return pl.pallas_call(
        kernel,
        out_shape=jax.ShapeDtypeStruct((n * hout_pad, wout, c),
                                       jnp.dtype(dtype_name)),
        grid_spec=pltpu.PrefetchScalarGridSpec(
            num_scalar_prefetch=0,
            grid=(n, c // cb, n_hb),
            in_specs=[pl.BlockSpec((hp_pad, wpad, cb),
                                   lambda b, cbi, hb: (b, 0, cbi))],
            out_specs=pl.BlockSpec((th, wout, cb),
                                   lambda b, cbi, hb: (b * n_hb + hb, 0, cbi)),
        ),
        compiler_params=pltpu.CompilerParams(
            dimension_semantics=("parallel", "parallel", "arbitrary"),
            vmem_limit_bytes=_VMEM_LIMIT),
    )


@functools.lru_cache(maxsize=None)
def _gap_call(N, HWp, Cp, HW, tc):
    kernel = functools.partial(_gap_kernel, inv_hw=1.0 / HW)
    return pl.pallas_call(
        kernel,
        out_shape=jax.ShapeDtypeStruct((N, Cp), jnp.float32),
        grid_spec=pltpu.PrefetchScalarGridSpec(
            num_scalar_prefetch=0,
            grid=(Cp // tc,),
            in_specs=[pl.BlockSpec((N, HWp, tc), lambda j: (0, 0, j))],
            out_specs=pl.BlockSpec((N, tc), lambda j: (0, j)),
        ),
        compiler_params=pltpu.CompilerParams(
            dimension_semantics=("parallel",), vmem_limit_bytes=_VMEM_LIMIT),
    )


# ----------------------------------------------------------------------------
# Wrapper glue around the kernels
# ----------------------------------------------------------------------------

def _prepare_matmul_weight(w, scale, bias):
    """Pad/cast a (K, N) weight + per-column scale/bias once (build time)."""
    K, N = w.shape
    Kp, Np = _round_up(K, 128), _round_up(N, 128)
    return dict(
        K=K, N=N, Kp=Kp, Np=Np,
        b_p=jnp.pad(w.astype(jnp.bfloat16), ((0, Kp - K), (0, Np - N))),
        s_p=jnp.pad(scale.reshape(1, -1).astype(jnp.float32),
                    ((0, 0), (0, Np - N))),
        c_p=jnp.pad(bias.reshape(1, -1).astype(jnp.float32),
                    ((0, 0), (0, Np - N))))


def fused_matmul_prepared(a, wp, relu, out_dtype=_ACT_DTYPE):
    """out = maybe_relu((a @ W) * scale + bias) using a pre-padded weight dict."""
    M, K = a.shape
    assert K == wp['K']
    Kp, Np = wp['Kp'], wp['Np']
    tm, Mp, tk, tn = _tile_plan(M, Kp, Np)
    a_p = jnp.pad(a.astype(jnp.bfloat16), ((0, Mp - M), (0, Kp - K)))
    out = _matmul_call(Mp, Kp, Np, bool(relu), tm, tn, tk,
                       jnp.dtype(out_dtype).name)(a_p, wp['b_p'], wp['s_p'],
                                                  wp['c_p'])
    return out[:M, :wp['N']]


def _pool3x3_s1(x, mode, pad):
    """Stride-1 3x3 pooling; pad=True -> 'same' (padding=1), else 'valid'."""
    N, H, W, C = x.shape
    if pad:
        Hout, Wout = H, W
    else:
        Hout, Wout = H - 2, W - 2
    pval = float('-inf') if mode == 'max' else 0.0
    n_hb = _cdiv(Hout, 32)
    th = _cdiv(Hout, n_hb)
    hout_pad = n_hb * th
    hp_pad = hout_pad + 2
    wpad = Wout + 2
    if pad:
        xp = jnp.pad(x, ((0, 0), (1, hp_pad - H - 1), (1, 1), (0, 0)),
                     constant_values=pval)
    else:
        xp = jnp.pad(x, ((0, 0), (0, hp_pad - H), (0, 0), (0, 0)),
                     constant_values=pval)
    cb = C
    for cand in (512, 256, 128):
        if C % cand == 0:
            cb = cand
            break
    xr = xp.reshape(N * hp_pad, wpad, C)
    out = _pool_call(N, hp_pad, wpad, C, cb, th, n_hb, Wout, Hout, mode,
                     x.dtype.name)(xr)
    return out.reshape(N, hout_pad, Wout, C)[:, :Hout]


def max_pool_3x3_s2(x):
    # kernel 3, stride 2, no padding == stride-1 valid pool then 2x subsample.
    return _pool3x3_s1(x, 'max', pad=False)[:, ::2, ::2, :]


def max_pool_3x3_s1p1(x):
    return _pool3x3_s1(x, 'max', pad=True)


def avg_pool_3x3_s1p1(x):
    # count_include_pad=False semantics.
    return _pool3x3_s1(x, 'avg', pad=True)


def global_avg_pool(x):
    # AdaptiveAvgPool2d((1,1)) -> (N, C) in float32
    N, H, W, C = x.shape
    HW = H * W
    HWp = _round_up(HW, 8)
    Cp = _round_up(C, 128)
    tc = 256 if Cp % 256 == 0 else 128
    xr = jnp.pad(x.reshape(N, HW, C), ((0, 0), (0, HWp - HW), (0, Cp - C)))
    out = _gap_call(N, HWp, Cp, HW, tc)(xr)
    return out[:, :C]


def conv_bn_relu(x, wp, stride=(1, 1), padding=(0, 0)):
    """BasicConv2d: Conv(bias=False) -> folded BatchNorm -> ReLU via Pallas."""
    N, H, W, Cin = x.shape
    kh, kw = wp['kh'], wp['kw']
    assert wp['cin'] == Cin
    sh, sw = stride
    ph, pw = padding
    if kh == 1 and kw == 1 and (sh, sw) == (1, 1) and (ph, pw) == (0, 0):
        patches = x.reshape(N * H * W, Cin)
        Ho, Wo = H, W
    else:
        xp = jnp.pad(x, ((0, 0), (ph, ph), (pw, pw), (0, 0)))
        Ho = (H + 2 * ph - kh) // sh + 1
        Wo = (W + 2 * pw - kw) // sw + 1
        # TODO(synk): im2col patches (bf16) are still materialized in HBM for
        # k>1 taps; folding taps into the K grid axis would need manual DMA.
        cols = [xp[:, di:di + (Ho - 1) * sh + 1:sh,
                   dj:dj + (Wo - 1) * sw + 1:sw, :]
                for di in range(kh) for dj in range(kw)]
        patches = jnp.concatenate(cols, axis=-1).reshape(N * Ho * Wo,
                                                         kh * kw * Cin)
    out = fused_matmul_prepared(patches, wp, relu=True)
    return out.reshape(N, Ho, Wo, wp['N'])


def _split_channels(h, splits):
    out, off = [], 0
    for s in splits:
        out.append(h[..., off:off + s])
        off += s
    return out


# ----------------------------------------------------------------------------
# Bilinear resize (two Pallas matmuls, 2*x-1 fused into the second)
# ----------------------------------------------------------------------------

def _bilinear_matrix(in_size, out_size):
    # PyTorch F.interpolate(mode='bilinear', align_corners=False) row weights.
    i = np.arange(out_size, dtype=np.float64)
    s = (i + 0.5) * in_size / out_size - 0.5
    s = np.maximum(s, 0.0)
    i0 = np.minimum(np.floor(s).astype(np.int64), in_size - 1)
    i1 = np.minimum(i0 + 1, in_size - 1)
    w1 = s - i0
    w0 = 1.0 - w1
    m = np.zeros((out_size, in_size), np.float32)
    m[np.arange(out_size), i0] += w0.astype(np.float32)
    m[np.arange(out_size), i1] += w1.astype(np.float32)
    return jnp.asarray(m)


@functools.lru_cache(maxsize=None)
def _prepared_resize_weight(in_size, out_size, scale_val, bias_val):
    w = _bilinear_matrix(in_size, out_size).T        # (in, out)
    scale = jnp.full((out_size,), scale_val, jnp.float32)
    bias = jnp.full((out_size,), bias_val, jnp.float32)
    return _prepare_matmul_weight(w, scale, bias)


def bilinear_resize_nchw(x_nchw, out_h, out_w, normalize):
    N, C, H, W = x_nchw.shape
    ww = _prepared_resize_weight(W, out_w, 1.0, 0.0)
    xw = fused_matmul_prepared(x_nchw.reshape(N * C * H, W), ww, relu=False)
    xw = xw.reshape(N, C, H, out_w)
    sc, bs = (2.0, -1.0) if normalize else (1.0, 0.0)
    wh = _prepared_resize_weight(H, out_h, sc, bs)
    xt = xw.transpose(0, 1, 3, 2).reshape(N * C * out_w, H)
    xh = fused_matmul_prepared(xt, wh, relu=False)
    return xh.reshape(N, C, out_w, out_h).transpose(0, 3, 2, 1)   # NHWC bf16


# ----------------------------------------------------------------------------
# Inception blocks (forward, NHWC bf16, fused 1x1 branch heads)
# ----------------------------------------------------------------------------

def inception_a(x, p):
    h = conv_bn_relu(x, p['heads'])
    b1, b5, bd = _split_channels(h, p['heads']['splits'])
    b5 = conv_bn_relu(b5, p['b5x5_2'], padding=(2, 2))
    bd = conv_bn_relu(bd, p['b3x3dbl_2'], padding=(1, 1))
    bd = conv_bn_relu(bd, p['b3x3dbl_3'], padding=(1, 1))
    bp = avg_pool_3x3_s1p1(x)
    bp = conv_bn_relu(bp, p['bpool'])
    return jnp.concatenate([b1, b5, bd, bp], axis=-1)


def inception_b(x, p):
    b3 = conv_bn_relu(x, p['b3x3'], stride=(2, 2))
    bd = conv_bn_relu(x, p['b3x3dbl_1'])
    bd = conv_bn_relu(bd, p['b3x3dbl_2'], padding=(1, 1))
    bd = conv_bn_relu(bd, p['b3x3dbl_3'], stride=(2, 2))
    bp = max_pool_3x3_s2(x)
    return jnp.concatenate([b3, bd, bp], axis=-1)


def inception_c(x, p):
    h = conv_bn_relu(x, p['heads'])
    b1, b7, bd = _split_channels(h, p['heads']['splits'])
    b7 = conv_bn_relu(b7, p['b7x7_2'], padding=(0, 3))
    b7 = conv_bn_relu(b7, p['b7x7_3'], padding=(3, 0))
    bd = conv_bn_relu(bd, p['b7x7dbl_2'], padding=(3, 0))
    bd = conv_bn_relu(bd, p['b7x7dbl_3'], padding=(0, 3))
    bd = conv_bn_relu(bd, p['b7x7dbl_4'], padding=(3, 0))
    bd = conv_bn_relu(bd, p['b7x7dbl_5'], padding=(0, 3))
    bp = avg_pool_3x3_s1p1(x)
    bp = conv_bn_relu(bp, p['bpool'])
    return jnp.concatenate([b1, b7, bd, bp], axis=-1)


def inception_d(x, p):
    h = conv_bn_relu(x, p['heads'])
    b3, b7 = _split_channels(h, p['heads']['splits'])
    b3 = conv_bn_relu(b3, p['b3x3_2'], stride=(2, 2))
    b7 = conv_bn_relu(b7, p['b7x7x3_2'], padding=(0, 3))
    b7 = conv_bn_relu(b7, p['b7x7x3_3'], padding=(3, 0))
    b7 = conv_bn_relu(b7, p['b7x7x3_4'], stride=(2, 2))
    bp = max_pool_3x3_s2(x)
    return jnp.concatenate([b3, b7, bp], axis=-1)


def inception_e(x, p, pool_type):
    h = conv_bn_relu(x, p['heads'])
    b1, b3, bd = _split_channels(h, p['heads']['splits'])
    b3 = jnp.concatenate([conv_bn_relu(b3, p['b3x3_2a'], padding=(0, 1)),
                          conv_bn_relu(b3, p['b3x3_2b'], padding=(1, 0))], -1)
    bd = conv_bn_relu(bd, p['b3x3dbl_2'], padding=(1, 1))
    bd = jnp.concatenate([conv_bn_relu(bd, p['b3x3dbl_3a'], padding=(0, 1)),
                          conv_bn_relu(bd, p['b3x3dbl_3b'], padding=(1, 0))], -1)
    if pool_type == 'avg':        # FIDInceptionE_1
        bp = avg_pool_3x3_s1p1(x)
    else:                         # FIDInceptionE_2
        bp = max_pool_3x3_s1p1(x)
    bp = conv_bn_relu(bp, p['bpool'])
    return jnp.concatenate([b1, b3, bd, bp], axis=-1)


# ----------------------------------------------------------------------------
# Deterministic synthetic parameters (folded conv + BN per BasicConv2d)
# ----------------------------------------------------------------------------

class _KeyGen:
    def __init__(self, seed):
        self._key = jax.random.PRNGKey(seed)

    def __call__(self):
        self._key, k = jax.random.split(self._key)
        return k


def _conv_params(key, cin, cout, kh, kw):
    k1, k2, k3 = jax.random.split(key, 3)
    fan_in = cin * kh * kw
    w = jax.random.normal(k1, (kh, kw, cin, cout), jnp.float32) * np.sqrt(2.0 / fan_in)
    scale = 1.0 + 0.1 * jax.random.normal(k2, (cout,), jnp.float32)  # gamma/sqrt(var+eps)
    bias = 0.1 * jax.random.normal(k3, (cout,), jnp.float32)          # beta - mean*scale
    return dict(w=w, scale=scale, bias=bias)


def _inception_a_params(kg, cin, pool_features):
    return dict(
        b1x1=_conv_params(kg(), cin, 64, 1, 1),
        b5x5_1=_conv_params(kg(), cin, 48, 1, 1),
        b5x5_2=_conv_params(kg(), 48, 64, 5, 5),
        b3x3dbl_1=_conv_params(kg(), cin, 64, 1, 1),
        b3x3dbl_2=_conv_params(kg(), 64, 96, 3, 3),
        b3x3dbl_3=_conv_params(kg(), 96, 96, 3, 3),
        bpool=_conv_params(kg(), cin, pool_features, 1, 1),
    )


def _inception_b_params(kg, cin):
    return dict(
        b3x3=_conv_params(kg(), cin, 384, 3, 3),
        b3x3dbl_1=_conv_params(kg(), cin, 64, 1, 1),
        b3x3dbl_2=_conv_params(kg(), 64, 96, 3, 3),
        b3x3dbl_3=_conv_params(kg(), 96, 96, 3, 3),
    )


def _inception_c_params(kg, cin, c7):
    return dict(
        b1x1=_conv_params(kg(), cin, 192, 1, 1),
        b7x7_1=_conv_params(kg(), cin, c7, 1, 1),
        b7x7_2=_conv_params(kg(), c7, c7, 1, 7),
        b7x7_3=_conv_params(kg(), c7, 192, 7, 1),
        b7x7dbl_1=_conv_params(kg(), cin, c7, 1, 1),
        b7x7dbl_2=_conv_params(kg(), c7, c7, 7, 1),
        b7x7dbl_3=_conv_params(kg(), c7, c7, 1, 7),
        b7x7dbl_4=_conv_params(kg(), c7, c7, 7, 1),
        b7x7dbl_5=_conv_params(kg(), c7, 192, 1, 7),
        bpool=_conv_params(kg(), cin, 192, 1, 1),
    )


def _inception_d_params(kg, cin):
    return dict(
        b3x3_1=_conv_params(kg(), cin, 192, 1, 1),
        b3x3_2=_conv_params(kg(), 192, 320, 3, 3),
        b7x7x3_1=_conv_params(kg(), cin, 192, 1, 1),
        b7x7x3_2=_conv_params(kg(), 192, 192, 1, 7),
        b7x7x3_3=_conv_params(kg(), 192, 192, 7, 1),
        b7x7x3_4=_conv_params(kg(), 192, 192, 3, 3),
    )


def _inception_e_params(kg, cin):
    return dict(
        b1x1=_conv_params(kg(), cin, 320, 1, 1),
        b3x3_1=_conv_params(kg(), cin, 384, 1, 1),
        b3x3_2a=_conv_params(kg(), 384, 384, 1, 3),
        b3x3_2b=_conv_params(kg(), 384, 384, 3, 1),
        b3x3dbl_1=_conv_params(kg(), cin, 448, 1, 1),
        b3x3dbl_2=_conv_params(kg(), 448, 384, 3, 3),
        b3x3dbl_3a=_conv_params(kg(), 384, 384, 1, 3),
        b3x3dbl_3b=_conv_params(kg(), 384, 384, 3, 1),
        bpool=_conv_params(kg(), cin, 192, 1, 1),
    )


# ------------------------- parameter preparation -----------------------------

def _prepare_conv(p):
    kh, kw, cin, cout = p['w'].shape
    wp = _prepare_matmul_weight(p['w'].reshape(kh * kw * cin, cout),
                                p['scale'], p['bias'])
    wp.update(kh=kh, kw=kw, cin=cin, cout=cout)
    return wp


def _fuse_1x1(plist):
    """Concatenate sibling 1x1 convs (same input) into one matmul weight."""
    w = jnp.concatenate([p['w'] for p in plist], axis=3)
    scale = jnp.concatenate([p['scale'] for p in plist], axis=0)
    bias = jnp.concatenate([p['bias'] for p in plist], axis=0)
    fused = _prepare_conv(dict(w=w, scale=scale, bias=bias))
    fused['splits'] = tuple(int(p['w'].shape[3]) for p in plist)
    return fused


def _prepare_params(raw):
    p = {}
    for name in ('Conv2d_1a_3x3', 'Conv2d_2a_3x3', 'Conv2d_2b_3x3',
                 'Conv2d_3b_1x1', 'Conv2d_4a_3x3'):
        p[name] = _prepare_conv(raw[name])

    def prep_a(r):
        return dict(
            heads=_fuse_1x1([r['b1x1'], r['b5x5_1'], r['b3x3dbl_1']]),
            b5x5_2=_prepare_conv(r['b5x5_2']),
            b3x3dbl_2=_prepare_conv(r['b3x3dbl_2']),
            b3x3dbl_3=_prepare_conv(r['b3x3dbl_3']),
            bpool=_prepare_conv(r['bpool']))

    def prep_b(r):
        return dict(
            b3x3=_prepare_conv(r['b3x3']),
            b3x3dbl_1=_prepare_conv(r['b3x3dbl_1']),
            b3x3dbl_2=_prepare_conv(r['b3x3dbl_2']),
            b3x3dbl_3=_prepare_conv(r['b3x3dbl_3']))

    def prep_c(r):
        return dict(
            heads=_fuse_1x1([r['b1x1'], r['b7x7_1'], r['b7x7dbl_1']]),
            b7x7_2=_prepare_conv(r['b7x7_2']),
            b7x7_3=_prepare_conv(r['b7x7_3']),
            b7x7dbl_2=_prepare_conv(r['b7x7dbl_2']),
            b7x7dbl_3=_prepare_conv(r['b7x7dbl_3']),
            b7x7dbl_4=_prepare_conv(r['b7x7dbl_4']),
            b7x7dbl_5=_prepare_conv(r['b7x7dbl_5']),
            bpool=_prepare_conv(r['bpool']))

    def prep_d(r):
        return dict(
            heads=_fuse_1x1([r['b3x3_1'], r['b7x7x3_1']]),
            b3x3_2=_prepare_conv(r['b3x3_2']),
            b7x7x3_2=_prepare_conv(r['b7x7x3_2']),
            b7x7x3_3=_prepare_conv(r['b7x7x3_3']),
            b7x7x3_4=_prepare_conv(r['b7x7x3_4']))

    def prep_e(r):
        return dict(
            heads=_fuse_1x1([r['b1x1'], r['b3x3_1'], r['b3x3dbl_1']]),
            b3x3_2a=_prepare_conv(r['b3x3_2a']),
            b3x3_2b=_prepare_conv(r['b3x3_2b']),
            b3x3dbl_2=_prepare_conv(r['b3x3dbl_2']),
            b3x3dbl_3a=_prepare_conv(r['b3x3dbl_3a']),
            b3x3dbl_3b=_prepare_conv(r['b3x3dbl_3b']),
            bpool=_prepare_conv(r['bpool']))

    p['Mixed_5b'] = prep_a(raw['Mixed_5b'])
    p['Mixed_5c'] = prep_a(raw['Mixed_5c'])
    p['Mixed_5d'] = prep_a(raw['Mixed_5d'])
    p['Mixed_6a'] = prep_b(raw['Mixed_6a'])
    p['Mixed_6b'] = prep_c(raw['Mixed_6b'])
    p['Mixed_6c'] = prep_c(raw['Mixed_6c'])
    p['Mixed_6d'] = prep_c(raw['Mixed_6d'])
    p['Mixed_6e'] = prep_c(raw['Mixed_6e'])
    p['Mixed_7a'] = prep_d(raw['Mixed_7a'])
    p['Mixed_7b'] = prep_e(raw['Mixed_7b'])
    p['Mixed_7c'] = prep_e(raw['Mixed_7c'])
    return p


def build_params(seed=0):
    kg = _KeyGen(seed)
    raw = {
        'Conv2d_1a_3x3': _conv_params(kg(), 3, 32, 3, 3),
        'Conv2d_2a_3x3': _conv_params(kg(), 32, 32, 3, 3),
        'Conv2d_2b_3x3': _conv_params(kg(), 32, 64, 3, 3),
        'Conv2d_3b_1x1': _conv_params(kg(), 64, 80, 1, 1),
        'Conv2d_4a_3x3': _conv_params(kg(), 80, 192, 3, 3),
        'Mixed_5b': _inception_a_params(kg, 192, 32),
        'Mixed_5c': _inception_a_params(kg, 256, 64),
        'Mixed_5d': _inception_a_params(kg, 288, 64),
        'Mixed_6a': _inception_b_params(kg, 288),
        'Mixed_6b': _inception_c_params(kg, 768, 128),
        'Mixed_6c': _inception_c_params(kg, 768, 160),
        'Mixed_6d': _inception_c_params(kg, 768, 160),
        'Mixed_6e': _inception_c_params(kg, 768, 192),
        'Mixed_7a': _inception_d_params(kg, 768),
        'Mixed_7b': _inception_e_params(kg, 1280),
        'Mixed_7c': _inception_e_params(kg, 2048),
    }
    return _prepare_params(raw)


# ----------------------------------------------------------------------------
# Full forward (matches InceptionV3.forward semantics)
# ----------------------------------------------------------------------------

def inception_v3_forward(x_nchw, params, output_blocks=(3,),
                         resize_input=True, normalize_input=True):
    output_blocks = tuple(sorted(output_blocks))
    last = max(output_blocks)
    outp = []

    if resize_input:
        h = bilinear_resize_nchw(x_nchw, 299, 299, normalize=normalize_input)
    else:
        h = jnp.transpose(x_nchw, (0, 2, 3, 1)).astype(_ACT_DTYPE)
        if normalize_input:
            h = 2.0 * h - 1.0

    def tap(h_nhwc):
        return jnp.transpose(h_nhwc, (0, 3, 1, 2)).astype(jnp.float32)

    # block 0
    h = conv_bn_relu(h, params['Conv2d_1a_3x3'], stride=(2, 2))
    h = conv_bn_relu(h, params['Conv2d_2a_3x3'])
    h = conv_bn_relu(h, params['Conv2d_2b_3x3'], padding=(1, 1))
    h = max_pool_3x3_s2(h)
    if 0 in output_blocks:
        outp.append(tap(h))
    if last == 0:
        return outp

    # block 1
    h = conv_bn_relu(h, params['Conv2d_3b_1x1'])
    h = conv_bn_relu(h, params['Conv2d_4a_3x3'])
    h = max_pool_3x3_s2(h)
    if 1 in output_blocks:
        outp.append(tap(h))
    if last == 1:
        return outp

    # block 2
    h = inception_a(h, params['Mixed_5b'])
    h = inception_a(h, params['Mixed_5c'])
    h = inception_a(h, params['Mixed_5d'])
    h = inception_b(h, params['Mixed_6a'])
    h = inception_c(h, params['Mixed_6b'])
    h = inception_c(h, params['Mixed_6c'])
    h = inception_c(h, params['Mixed_6d'])
    h = inception_c(h, params['Mixed_6e'])
    if 2 in output_blocks:
        outp.append(tap(h))
    if last == 2:
        return outp

    # block 3
    h = inception_d(h, params['Mixed_7a'])
    h = inception_e(h, params['Mixed_7b'], pool_type='avg')   # FIDInceptionE_1
    h = inception_e(h, params['Mixed_7c'], pool_type='max')   # FIDInceptionE_2
    g = global_avg_pool(h)                                    # (N, 2048) f32
    outp.append(g.reshape(g.shape[0], g.shape[1], 1, 1))      # (N, 2048, 1, 1)
    return outp


# ----------------------------------------------------------------------------
if __name__ == "__main__":
    key = jax.random.PRNGKey(0)
    # Module expects Bx3xHxW inputs with values in (0, 1); small spatial size.
    x = jax.random.uniform(key, (2, 3, 16, 16), dtype=jnp.float32)

    params = build_params(seed=0)
    outs = inception_v3_forward(x, params, output_blocks=(3,),
                                resize_input=True, normalize_input=True)
    jax.block_until_ready(outs)

    assert len(outs) == 1
    assert outs[0].shape == (2, 2048, 1, 1)
    assert outs[0].dtype == jnp.float32
    assert bool(jnp.all(jnp.isfinite(outs[0])))
    print("KERNEL_OK")
</pallas_src>

<mosaic_0001>
module attributes {stable_mosaic.version = 11 : i64} {
  func.func @_matmul_kernel(%arg0: i32, %arg1: i32, %arg2: i32, %arg3: memref<128x128xbf16, #tpu.memory_space<vmem>>, %arg4: memref<128x128xbf16, #tpu.memory_space<vmem>>, %arg5: memref<1x128xf32, #tpu.memory_space<vmem>>, %arg6: memref<1x128xf32, #tpu.memory_space<vmem>>, %arg7: memref<128x128xbf16, #tpu.memory_space<vmem>>, %arg8: memref<128x128xf32, #tpu.memory_space<vmem>>) attributes {dimension_semantics = [#tpu.dimension_semantics<parallel>, #tpu.dimension_semantics<parallel>, #tpu.dimension_semantics<arbitrary>], iteration_bounds = array<i64: 1, 3, 1>, scalar_prefetch = 0 : i64, scratch_operands = 1 : i64, tpu.core_type = #tpu.core_type<tc>, window_params = [{transform_indices = @transform_0, window_bounds = array<i64: 128, 128>}, {transform_indices = @transform_1, window_bounds = array<i64: 128, 128>}, {transform_indices = @transform_2, window_bounds = array<i64: 1, 128>}, {transform_indices = @transform_3, window_bounds = array<i64: 1, 128>}, {transform_indices = @transform_4, window_bounds = array<i64: 128, 128>}]} {
    %c0_i32 = arith.constant 0 : i32
    %0 = arith.cmpi eq, %arg2, %c0_i32 : i32
    %1 = arith.extui %0 : i1 to i32
    %c0_i32_0 = arith.constant 0 : i32
    %2 = arith.cmpi ne, %1, %c0_i32_0 : i32
    scf.if %2 {
      %cst_10 = arith.constant 0.000000e+00 : f32
      %12 = vector.broadcast %cst_10 : f32 to vector<128x128xf32>
      %c0_11 = arith.constant 0 : index
      %c0_12 = arith.constant 0 : index
      %13 = vector.load %arg8[%c0_11, %c0_12] : memref<128x128xf32, #tpu.memory_space<vmem>>, vector<128x128xf32>
      tpu.vector_store %arg8[%c0_11, %c0_12], %12 {strides = array<i32>} : memref<128x128xf32, #tpu.memory_space<vmem>>, vector<128x128xf32>,
    } else {
    }
    %c0 = arith.constant 0 : index
    %c0_1 = arith.constant 0 : index
    %3 = vector.load %arg8[%c0, %c0_1] : memref<128x128xf32, #tpu.memory_space<vmem>>, vector<128x128xf32>
    %c0_2 = arith.constant 0 : index
    %c0_3 = arith.constant 0 : index
    %4 = vector.load %arg3[%c0_2, %c0_3] : memref<128x128xbf16, #tpu.memory_space<vmem>>, vector<128x128xbf16>
    %c0_4 = arith.constant 0 : index
    %c0_5 = arith.constant 0 : index
    %5 = vector.load %arg4[%c0_4, %c0_5] : memref<128x128xbf16, #tpu.memory_space<vmem>>, vector<128x128xbf16>
    %cst = arith.constant dense<0.000000e+00> : vector<128x128xf32>
    %6 = tpu.matmul %4, %5, %cst {dimension_numbers = #tpu.dot_dimension_numbers<[1], [0], [0], [1], [0, 0, 1, 1], [], []>} : vector<128x128xbf16>, vector<128x128xbf16>, vector<128x128xf32> -> vector<128x128xf32>
    %7 = arith.addf %3, %6 : vector<128x128xf32>
    %c0_6 = arith.constant 0 : index
    %c0_7 = arith.constant 0 : index
    %8 = vector.load %arg8[%c0_6, %c0_7] : memref<128x128xf32, #tpu.memory_space<vmem>>, vector<128x128xf32>
    tpu.vector_store %arg8[%c0_6, %c0_7], %7 {strides = array<i32>} : memref<128x128xf32, #tpu.memory_space<vmem>>, vector<128x128xf32>,
    %c0_i32_8 = arith.constant 0 : i32
    %9 = arith.cmpi eq, %arg2, %c0_i32_8 : i32
    %10 = arith.extui %9 : i1 to i32
    %c0_i32_9 = arith.constant 0 : i32
    %11 = arith.cmpi ne, %10, %c0_i32_9 : i32
    scf.if %11 {
      %c0_10 = arith.constant 0 : index
      %c0_11 = arith.constant 0 : index
      %12 = vector.load %arg8[%c0_10, %c0_11] : memref<128x128xf32, #tpu.memory_space<vmem>>, vector<128x128xf32>
      %c0_12 = arith.constant 0 : index
      %c0_13 = arith.constant 0 : index
      %13 = vector.load %arg5[%c0_12, %c0_13] : memref<1x128xf32, #tpu.memory_space<vmem>>, vector<1x128xf32>
      %14 = vector.broadcast %13 : vector<1x128xf32> to vector<128x128xf32>
      %15 = arith.mulf %12, %14 : vector<128x128xf32>
      %c0_14 = arith.constant 0 : index
      %c0_15 = arith.constant 0 : index
      %16 = vector.load %arg6[%c0_14, %c0_15] : memref<1x128xf32, #tpu.memory_space<vmem>>, vector<1x128xf32>
      %17 = vector.broadcast %16 : vector<1x128xf32> to vector<128x128xf32>
      %18 = arith.addf %15, %17 : vector<128x128xf32>
      %19 = arith.truncf %18 : vector<128x128xf32> to vector<128x128xbf16>
      %c0_16 = arith.constant 0 : index
      %c0_17 = arith.constant 0 : index
      %20 = vector.load %arg7[%c0_16, %c0_17] : memref<128x128xbf16, #tpu.memory_space<vmem>>, vector<128x128xbf16>
      tpu.vector_store %arg7[%c0_16, %c0_17], %19 {strides = array<i32>} : memref<128x128xbf16, #tpu.memory_space<vmem>>, vector<128x128xbf16>,
    } else {
    }
    return
  }
  func.func @transform_0(%arg0: i32, %arg1: i32, %arg2: i32) -> (i32, i32) {
    %c0_i32 = arith.constant 0 : i32
    return %arg0, %arg2 : i32, i32
  }
  func.func @transform_1(%arg0: i32, %arg1: i32, %arg2: i32) -> (i32, i32) {
    %c0_i32 = arith.constant 0 : i32
    return %arg2, %arg1 : i32, i32
  }
  func.func @transform_2(%arg0: i32, %arg1: i32, %arg2: i32) -> (i32, i32) {
    %c0_i32 = arith.constant 0 : i32
    %c0_i32_0 = arith.constant 0 : i32
    return %c0_i32, %arg1 : i32, i32
  }
  func.func @transform_3(%arg0: i32, %arg1: i32, %arg2: i32) -> (i32, i32) {
    %c0_i32 = arith.constant 0 : i32
    %c0_i32_0 = arith.constant 0 : i32
    return %c0_i32, %arg1 : i32, i32
  }
  func.func @transform_4(%arg0: i32, %arg1: i32, %arg2: i32) -> (i32, i32) {
    %c0_i32 = arith.constant 0 : i32
    return %arg0, %arg1 : i32, i32
  }
}

</mosaic_0001>

<bundles_post_ra>
// kernel: tpu_custom_call.1
= control target key start
LH: loop header
LB: loop body
LE: loop exit
PB: predicated region body
PF: predicated region fallthrough
CT: control target
= control target key end

     0   :  { %s1552_s0 = inlined_call_operand.hbm [shape: bf16[128,128], index: 0, kind: input, shape index: {}]   ;;  %s1553_s1 = inlined_call_operand.hbm [shape: bf16[128,384], index: 1, kind: input, shape index: {}]   ;;  %s1554_s2 = inlined_call_operand.hbm [shape: f32[1,384], index: 2, kind: input, shape index: {}]   ;;  %s1555_s3 = inlined_call_operand.hbm [shape: f32[1,384], index: 3, kind: input, shape index: {}]   ;;  %s1556_s4 = inlined_call_operand.hbm [shape: bf16[128,384], index: 4, kind: output, shape index: {}]  }
   0x1   :  { %1559 = sst [smem:[#allocation17_spill]] %s1552_s0 }
   0x2   :  { %1560 = sst [smem:[#allocation18_spill]] %s1553_s1 }
   0x3   :  { %1561 = sst [smem:[#allocation19_spill]] %s1554_s2 }
   0x4   :  { %9 = vsyncpa [#allocation4], 0 }
   0x5   :  { %10 = vsyncpa [#allocation7], 0 }
   0x6   :  { %12 = vsyncpa [#allocation7 + $0x1], 0 }
   0x7   :  { %13 = vsyncpa [#allocation10], 0 }
   0x8   :  { %15 = vsyncpa [#allocation10 + $0x1], 0 }
   0x9   :  { %16 = vsyncpa [#allocation5], 0 }
   0xa   :  { %18 = vsyncpa [#allocation5 + $0x1], 0  ;;  %s1335_s15 = smov 0   ;;  %s1337_s16 = smov 0  }
   0xb   :  { %s1339_s17 = smov 0   ;;  %s1341_s18 = smov 0  }
   0xc   :  { %s1343_s19 = smov 0   ;;  %s1345_s20 = smov 0  }
   0xd LB: > { %s39_s21 = sadd.s32 1, %s1297_s19  ;;  %s80_s22 = sadd.s32 1, %s1289_s17  ;;  %s1301_s20 = sphi %s1345_s20, %s24_s20   ;;  %s1297_s19 = sphi %s1343_s19, %s1578_s19   ;;  %s1293_s18 = sphi %s1341_s18, %s1577_s18   ;;  %s1289_s17 = sphi %s1339_s17, %s1576_s17   ;;  %s1285_s16 = sphi %s1337_s16, %s1575_s16   ;;  %s1281_s15 = sphi %s1335_s15, %s1574_s15  }
   0xe   : > { %p41_p0 = scmp.ge.s32.totalorder %s39_s21, 3  ;;  %p87_p1 = scmp.ne.s32.totalorder %s1289_s17, %s1285_s16 }
   0xf   : > { %p88_p2 = scmp.eq.s32.totalorder %s1301_s20, 0  ;;  %p1031_p5 = scmp.lt.s32.totalorder %s1301_s20, 3 }
  0x10   : > { %s1580_s21 = smov (%p41_p0, %s39_s21), 0  ;;  %s215_s25 = sand.u32 1, %s1301_s20  }
  0x11   : > { %1562 = sst [smem:[#allocation16_spill]] %s1580_s21  ;;  %p1375_p3 = por %p88_p2, %p87_p1 }
  0x12   : > { %s76_s24 = ssub.s32 %s1297_s19, %s1580_s21  ;;  %s1384_s26 = sand.u32 1, %s1289_s17  }
  0x13   : > { %p78_p4 = scmp.eq.s32.totalorder %s76_s24, 0  ;;  %s839_s28 = sshll.u32 %s1384_s26, 6 }
  0x14   : > { %s840_s29 = sshll.u32 %s1297_s19, 2  ;;  %s1564_s1 = sld [smem:[#allocation18_spill]] }
  0x15   : > { %s1387_s27 = scalar_select %p78_p4, %s1289_s17, %s80_s22  }
  0x16   : > { %s219_s7 = scalar_lea.vmem [#allocation6], %s839_s28  ;;  %p1396_p6 = pnand %p1031_p5, %p1375_p3 }
  0x17   : > { %s229_s8 = sshll.u32 %s219_s7, 4  ;;  %s1400_s11 = scalar_lea.sflag [#allocation7], %s215_s25  ;;  %s230_s8 = int_to_ptr.vmem [resolvable:$true] %s229_s8 }
  0x18   : > { %s1303_s12 = smov 192   ;;  %s1557_s13 = smov 64  }
  0x19   : > { %s1305_s14 = smov 4   ;;  %s1408_s22 = sadd.s32 4294967295, %s1301_s20  }
  0x1a   : > { %s226_s6 = scalar_lea.hbm %s1564_s1, %s840_s29  ;;  %s835_s23 = sadd.s32 4294967294, %s1301_s20  }
  0x1b   : > { %s227_s9 = sshll.u32 %s226_s6, 4  ;;  %p93_p7 = scmp.ne.s32.totalorder %s1285_s16, %s1281_s15  ;;  %s228_s9 = int_to_ptr.hbm [resolvable:$true] %s227_s9 }
  0x1c   : > { %1019 = dma.hbm_to_vmem [thread:$0]  (!%p1396_p6), %s228_s9, 1024, %s230_s8, %s1400_s11, %s1303_s12, %s1557_s13, %s1305_s14  }
  0x1d   : > { %p94_p8 = scmp.eq.s32.totalorder %s1408_s22, 0  ;;  %p171_p9 = scmp.eq.s32.totalorder %s1408_s22, 2 }
  0x1e   : > { %p177_p10 = scmp.eq.s32.totalorder %s835_s23, 2  ;;  %p836_p12 = scmp.ge.s32.totalorder %s1301_s20, 1 }
  0x1f   : > { %p1417_p11 = por %p94_p8, %p93_p7  ;;  %p1425_p13 = por %p171_p9, %p87_p1 }
  0x20   : > { %p1429_p0 = por %p177_p10, %p93_p7  ;;  %p184_p2 = scmp.lt.s32.totalorder %s1301_s20, 4 }
  0x21   : > { %s1569_s0 = sld [smem:[#allocation17_spill]]  ;;  %s1306_s7 = smov [#allocation3]  }
  0x22   : > { %p1437_p3 = pnand %p836_p12, %p184_p2  ;;  %s201_s8 = sshll.u32 %s1306_s7, 4  ;;  %s202_s8 = int_to_ptr.vmem [resolvable:$true] %s201_s8 }
  0x23   : > { %s1571_s2 = sld [smem:[#allocation19_spill]]  ;;  %s242_s29 = scalar_lea.vmem [#allocation8], %s1384_s26 }
  0x24   : > { %p1012_p1 = pneg %p1437_p3  ;;  %s249_s30 = sshll.u32 %s242_s29, 4  ;;  %s250_s30 = int_to_ptr.vmem [resolvable:$true] %s249_s30 }
  0x25   : > { %s262_s9 = scalar_lea.hbm %s1555_s3, %s1297_s19  ;;  %s257_s29 = scalar_lea.sflag [#allocation10], %s1384_s26 }
  0x26   : > { %p1013_p4 = pnand %p1012_p1, %p94_p8  ;;  %s264_s12 = sshll.u32 %s262_s9, 4  ;;  %s265_s12 = int_to_ptr.hbm [resolvable:$true] %s264_s12 }
  0x27   : > { %s199_s5 = sshll.u32 %s1569_s0, 4  ;;  %s1572_s0 = smov 64   ;;  %s200_s5 = int_to_ptr.hbm [resolvable:$true] %s199_s5 }
  0x28   : > { %1015 = dma.hbm_to_vmem [thread:$0]  (!%p1013_p4), %s200_s5, 1024, %s202_s8, [#allocation4], %s1572_s0, %s1572_s0, %s1305_s14  }
  0x29   : > { %s245_s23 = scalar_lea.hbm %s1571_s2, %s1297_s19  ;;  %s259_s2 = scalar_lea.vmem [#allocation9], %s1384_s26 }
  0x2a   : > { %s247_s13 = sshll.u32 %s245_s23, 4  ;;  %s266_s21 = sshll.u32 %s259_s2, 4  ;;  %s248_s13 = int_to_ptr.hbm [resolvable:$true] %s247_s13  ;;  %s267_s21 = int_to_ptr.vmem [resolvable:$true] %s266_s21 }
  0x2b   : > { %1022 = dma.hbm_to_vmem [thread:$0]  (!%p1396_p6), %s248_s13, 16, %s250_s30, %s1400_s11  }
  0x2c   : > { %1025 = dma.hbm_to_vmem [thread:$0]  (!%p1396_p6), %s265_s12, 16, %s267_s21, %s257_s29  }
  0x2d   : > { %275 = sbr.rel (%p1437_p3) target bundleno = 259 (0x103), region = 36 }
  0x32   : > { %1264 = dma.done.wait (%p94_p8), [#allocation4], 1024  }
  0x33   : > { %1266 = vsyncadd (%p94_p8), [#allocation4], 4294966272  ;;  %s282_s0 = sand.u32 1, %s1408_s22   ;;  %s1472_s1 = sand.u32 1, %s1285_s16  }
  0x34   : > { %s843_s2 = sshll.u32 %s1472_s1, 6  ;;  %s283_s26 = scalar_lea.sflag [#allocation7], %s282_s0 }
  0x35   : > { %s1477_s21 = scalar_lea.vmem [#allocation6], %s843_s2 }
  0x36   : > { %1268 = dma.done.wait (%p1417_p11), %s283_s26, 1040  }
  0x37   : > { %1270 = vsyncadd (%p1417_p11), %s283_s26, 4294966256  ;;  %s295_s10 = scalar_lea.vmem [#allocation8], %s1472_s1  ;;  %s302_s11 = scalar_lea.sflag [#allocation10], %s1472_s1 }
  0x38   : > { %s304_s13 = scalar_lea.vmem [#allocation9], %s1472_s1 }
  0x39   : > { %1272 = dma.done.wait (%p1417_p11), %s302_s11, 16  }
  0x3a   : > { %1274 = vsyncadd (%p1417_p11), %s302_s11, 4294967280  ;;  %v928_v0 = vld [vmem:[%s1477_s21 + $0x38] sm:$0xff]  ;;  %v927_v1 = vld [vmem:[%s1477_s21 + $0x30] sm:$0xff]  ;;  %s1504_s14 = scalar_lea.vmem [#allocation11], %s843_s2  ;;  %s910_s22 = sshll.u32 %s1293_s18, 2 }
  0x3b   : > { %505 = vmatpush.bf16.msra.mxu0 %v928_v0  ;;  %976 = vmatpush.bf16.msra.mxu1 %v928_v0  ;;  %v926_v2 = vld [vmem:[%s1477_s21 + $0x28] sm:$0xff]  ;;  %v925_v3 = vld [vmem:[%s1477_s21 + $0x20] sm:$0xff]  ;;  %v924_v4 = vld [vmem:[%s1477_s21 + $0x18] sm:$0xff]  ;;  %s691_s6 = scalar_lea.hbm %s1556_s4, %s910_s22  ;;  %s692_s8 = sshll.u32 %s1504_s14, 4  ;;  %s693_s8 = int_to_ptr.vmem [resolvable:$true] %s692_s8 }
  0x3c   : > { %977 = vmatpush.bf16.msra.mxu2 %v928_v0  ;;  %978 = vmatpush.bf16.msra.mxu3 %v928_v0  ;;  %v923_v5 = vld [vmem:[%s1477_s21 + $0x10] sm:$0xff]  ;;  %v922_v6 = vld [vmem:[%s1477_s21 + $0x8] sm:$0xff]  ;;  %v921_v7 = vld [vmem:[%s1477_s21] sm:$0xff]  ;;  %s694_s23 = sshll.u32 %s691_s6, 4  ;;  %s678_s18 = scalar_lea.sflag [#allocation5], %s1472_s1  ;;  %s695_s23 = int_to_ptr.hbm [resolvable:$true] %s694_s23 }
  0x3d   : > { %v913_v8 = vld [vmem:[#allocation3] sm:$0xff]  ;;  %v915_v9 = vld [vmem:[#allocation3 + $0x10] sm:$0xff]  ;;  %v914_v12 = vld [vmem:[#allocation3 + $0x8] sm:$0xff]  ;;  %s1225_s30 = sshra.s32 %s695_s23, 4  ;;  %s1231_s29 = scalar_lea.hbm %s1556_s4, 192  ;;  %s1226_s30 = int_to_ptr.hbm [resolvable:$true] %s1225_s30 }
  0x3e   : > { %v917_v10 = vld [vmem:[#allocation3 + $0x20] sm:$0xff]  ;;  %v919_v11 = vld [vmem:[#allocation3 + $0x30] sm:$0xff]  ;;  %v916_v13 = vld [vmem:[#allocation3 + $0x18] sm:$0xff]  ;;  %s1227_s7 = scalar_lea.hbm %s1226_s30, 64  ;;  %p1232_p8 = scmp.lt.s32.totalorder %s1226_s30, %s1556_s4 }
  0x3f   : > { %506 = vmatpush.bf16.msra.mxu0 %v927_v1  ;;  %979 = vmatpush.bf16.msra.mxu1 %v927_v1  ;;  %v918_v14 = vld [vmem:[#allocation3 + $0x28] sm:$0xff]  ;;  %v920_v15 = vld [vmem:[#allocation3 + $0x38] sm:$0xff]  ;;  %v1089_v18 = vld [vmem:[%s295_s10] ss:$0 sm:$0xff]  ;;  %p1228_p5 = scmp.ne.s32.totalorder %s1226_s30, %s1227_s7  ;;  %p1233_p9 = scmp.lt.s32.totalorder %s1231_s29, %s1227_s7 }
  0x40   : > { %980 = vmatpush.bf16.msra.mxu2 %v927_v1  ;;  %981 = vmatpush.bf16.msra.mxu3 %v927_v1  ;;  %v1090_v20 = vld [vmem:[%s304_s13] ss:$0 sm:$0xff] }
  0x41   : > { %p1229_p6 = pnand %p1228_p5, %p1425_p13  ;;  %p1234_p10 = por %p1233_p9, %p1232_p8 }
  0x43   : > { %507 = vmatpush.bf16.msra.mxu0 %v926_v2  ;;  %982 = vmatpush.bf16.msra.mxu1 %v926_v2  ;;  %p1230_p7 = pneg %p1229_p6 }
  0x44   : > { %983 = vmatpush.bf16.msra.mxu2 %v926_v2  ;;  %984 = vmatpush.bf16.msra.mxu3 %v926_v2 }
  0x45   : > { %p1235_p11 = pnand %p1234_p10, %p1230_p7 }
  0x47   : > { %508 = vmatpush.bf16.msra.mxu0 %v925_v3  ;;  %985 = vmatpush.bf16.msra.mxu1 %v925_v3 }
  0x48   : > { %986 = vmatpush.bf16.msra.mxu2 %v925_v3  ;;  %987 = vmatpush.bf16.msra.mxu3 %v925_v3 }
  0x4b   : > { %509 = vmatpush.bf16.msra.mxu0 %v924_v4  ;;  %988 = vmatpush.bf16.msra.mxu1 %v924_v4 }
  0x4c   : > { %989 = vmatpush.bf16.msra.mxu2 %v924_v4  ;;  %990 = vmatpush.bf16.msra.mxu3 %v924_v4 }
  0x4f   : > { %510 = vmatpush.bf16.msra.mxu0 %v923_v5  ;;  %991 = vmatpush.bf16.msra.mxu1 %v923_v5 }
  0x50   : > { %992 = vmatpush.bf16.msra.mxu2 %v923_v5  ;;  %993 = vmatpush.bf16.msra.mxu3 %v923_v5 }
  0x53   : > { %511 = vmatpush.bf16.msra.mxu0 %v922_v6  ;;  %994 = vmatpush.bf16.msra.mxu1 %v922_v6 }
  0x54   : > { %995 = vmatpush.bf16.msra.mxu2 %v922_v6  ;;  %996 = vmatpush.bf16.msra.mxu3 %v922_v6 }
  0x57   : > { %512 = vmatpush.bf16.msra.mxu0 %v921_v7  ;;  %997 = vmatpush.bf16.msra.mxu1 %v921_v7 }
  0x58   : > { %998 = vmatpush.bf16.msra.mxu2 %v921_v7  ;;  %999 = vmatpush.bf16.msra.mxu3 %v921_v7 }
  0x5a   : > { %513 = vmatmul.bf16.vlgmr.msra.gmra.mxu0 %v913_v8  ;;  %523 = vmatmul.bf16.vlgmr.msra.gmra.mxu1 %v915_v9 }
  0x5b   : > { %533 = vmatmul.bf16.vlgmr.msra.gmra.mxu2 %v917_v10  ;;  %543 = vmatmul.bf16.vlgmr.msra.gmra.mxu3 %v919_v11 }
  0x6a   : > { %518 = vmatmul.bf16.gmra.mxu0 %v914_v12  ;;  %528 = vmatmul.bf16.gmra.mxu1 %v916_v13 }
  0x6b   : > { %538 = vmatmul.bf16.gmra.mxu2 %v918_v14  ;;  %548 = vmatmul.bf16.gmra.mxu3 %v920_v15 }
  0xd7   : > { %v514_v16 = vpop.f32.mrf.mxu0  ;;  %v524_v17 = vpop.f32.mrf.mxu1 }
  0xd8   : > { %v609_v19 = vmul.f32 %v1089_v18, %v514_v16  ;;  %v613_v21 = vmul.f32 %v1089_v18, %v524_v17 }
  0xda   : > { %v629_v28 = vadd.f32 %v1090_v20, %v609_v19  ;;  %v633_v29 = vadd.f32 %v1090_v20, %v613_v21 }
  0xde   : > { %v534_v22 = vpop.f32.mrf.mxu2  ;;  %v544_v23 = vpop.f32.mrf.mxu3 }
  0xdf   : > { %v516_v24 = vpop.f32.mrf.mxu0  ;;  %v526_v25 = vpop.f32.mrf.mxu1  ;;  %v617_v34 = vmul.f32 %v1089_v18, %v534_v22  ;;  %v621_v35 = vmul.f32 %v1089_v18, %v544_v23 }
  0xe0   : > { %v610_v26 = vmul.f32 %v1089_v18, %v516_v24  ;;  %v614_v27 = vmul.f32 %v1089_v18, %v526_v25 }
  0xe1   : > { %v637_v42 = vadd.f32 %v1090_v20, %v617_v34  ;;  %v641_v43 = vadd.f32 %v1090_v20, %v621_v35 }
  0xe2   : > { %v630_v30 = vadd.f32 %v1090_v20, %v610_v26  ;;  %v634_v31 = vadd.f32 %v1090_v20, %v614_v27 }
  0xe4   : > { %v932_v32 = vpack.c.bf16 %v630_v30, %v629_v28  ;;  %v942_v33 = vpack.c.bf16 %v634_v31, %v633_v29 }
  0xe6   : > { %933 = vst [vmem:[%s1504_s14] sm:$0xff] %v932_v32   ;;  %v536_v36 = vpop.f32.mrf.mxu2  ;;  %v546_v37 = vpop.f32.mrf.mxu3 }
  0xe7   : > { %970 = vst [vmem:[%s1504_s14 + $0x10] sm:$0xff] %v942_v33   ;;  %v618_v38 = vmul.f32 %v1089_v18, %v536_v36  ;;  %v622_v39 = vmul.f32 %v1089_v18, %v546_v37  ;;  %v519_v40 = vpop.f32.mrf.mxu0  ;;  %v529_v41 = vpop.f32.mrf.mxu1 }
  0xe8   : > { %v611_v48 = vmul.f32 %v1089_v18, %v519_v40  ;;  %v615_v49 = vmul.f32 %v1089_v18, %v529_v41 }
  0xe9   : > { %v638_v44 = vadd.f32 %v1090_v20, %v618_v38  ;;  %v642_v45 = vadd.f32 %v1090_v20, %v622_v39 }
  0xea   : > { %v631_v56 = vadd.f32 %v1090_v20, %v611_v48  ;;  %v635_v57 = vadd.f32 %v1090_v20, %v615_v49 }
  0xeb   : > { %v952_v46 = vpack.c.bf16 %v638_v44, %v637_v42  ;;  %v962_v47 = vpack.c.bf16 %v642_v45, %v641_v43 }
  0xed   : > { %972 = vst [vmem:[%s1504_s14 + $0x20] sm:$0xff] %v952_v46  }
  0xee   : > { %974 = vst [vmem:[%s1504_s14 + $0x30] sm:$0xff] %v962_v47   ;;  %v539_v50 = vpop.f32.mrf.mxu2  ;;  %v549_v51 = vpop.f32.mrf.mxu3 }
  0xef   : > { %v521_v52 = vpop.f32.mrf.mxu0  ;;  %v531_v53 = vpop.f32.mrf.mxu1  ;;  %v619_v62 = vmul.f32 %v1089_v18, %v539_v50  ;;  %v623_v63 = vmul.f32 %v1089_v18, %v549_v51 }
  0xf0   : > { %v612_v54 = vmul.f32 %v1089_v18, %v521_v52  ;;  %v616_v55 = vmul.f32 %v1089_v18, %v531_v53 }
  0xf1   : > { %v639_v4 = vadd.f32 %v1090_v20, %v619_v62  ;;  %v643_v5 = vadd.f32 %v1090_v20, %v623_v63 }
  0xf2   : > { %v632_v58 = vadd.f32 %v1090_v20, %v612_v54  ;;  %v636_v59 = vadd.f32 %v1090_v20, %v616_v55 }
  0xf4   : > { %v937_v60 = vpack.c.bf16 %v632_v58, %v631_v56  ;;  %v947_v61 = vpack.c.bf16 %v636_v59, %v635_v57 }
  0xf6   : > { %969 = vst [vmem:[%s1504_s14 + $0x8] sm:$0xff] %v937_v60   ;;  %v541_v0 = vpop.f32.mrf.mxu2  ;;  %v551_v1 = vpop.f32.mrf.mxu3 }
  0xf7   : > { %971 = vst [vmem:[%s1504_s14 + $0x18] sm:$0xff] %v947_v61   ;;  %v620_v2 = vmul.f32 %v1089_v18, %v541_v0  ;;  %v624_v3 = vmul.f32 %v1089_v18, %v551_v1 }
  0xf9   : > { %v640_v6 = vadd.f32 %v1090_v20, %v620_v2  ;;  %v644_v7 = vadd.f32 %v1090_v20, %v624_v3 }
  0xfb   : > { %v957_v8 = vpack.c.bf16 %v640_v6, %v639_v4  ;;  %v967_v9 = vpack.c.bf16 %v644_v7, %v643_v5 }
  0xfd   : > { %973 = vst [vmem:[%s1504_s14 + $0x28] sm:$0xff] %v957_v8  }
  0xfe   : > { %975 = vst [vmem:[%s1504_s14 + $0x38] sm:$0xff] %v967_v9  }
  0xff   : > { %1238 = shalt.err (!%p1235_p11)
}
 0x100   : > { %s1307_s1 = smov 64   ;;  %s1308_s26 = smov 192  }
 0x101   : > { %s1309_s21 = smov 4  }
 0x102   : > { %1010 = dma.vmem_to_hbm [thread:$0]  (%p1425_p13), %s693_s8, 1024, %s695_s23, %s678_s18, %s1307_s1, %s1308_s26, %s1309_s21  }
 0x103 PF: > { %p1033_p12 = scmp.ge.s32.totalorder %s1301_s20, 2  ;;  %s709_s10 = sand.u32 1, %s1281_s15  }
 0x104   : > { %s710_s11 = scalar_lea.sflag [#allocation5], %s709_s10 }
 0x105   : > { %p1027_p2 = pnand %p1033_p12, %p1429_p0 }
 0x107   : > { %p1028_p3 = pneg %p1027_p2 }
 0x109   : > { %1276 = dma.done.wait (%p1028_p3), %s710_s11, 1024  }
 0x10a   : > { %1278 = vsyncadd (%p1028_p3), %s710_s11, 4294966272  ;;  %s24_s20 = sadd.s32 1, %s1301_s20   ;;  %s1573_s25 = sld [smem:[#allocation16_spill]] }
 0x10b   : > { %p21_p1 = scmp.ge.s32.totalorder %s24_s20, 5   ;;  %s1574_s15 = smov %s1285_s16 }
 0x10c   : > { %s1575_s16 = smov %s1289_s17  ;;  %s1576_s17 = smov %s1387_s27 }
 0x10d   : > { %s1577_s18 = smov %s1297_s19  ;;  %23 = sbr.rel (!%p21_p1) target bundleno = 13 (0xd), region = 119 }
 0x110   : > { %s1578_s19 = smov %s1573_s25 }
 0x112   :  { %716 = vsyncpa [#allocation4], 1 }
 0x113   :  { %718 = vsyncpa [#allocation4 + $0x1], 1 }
 0x114   :  { %719 = vsyncpa [#allocation7], 1 }
 0x115   :  { %721 = vsyncpa [#allocation7 + $0x1], 1 }
 0x116   :  { %722 = vsyncpa [#allocation10], 1 }
 0x117   :  { %724 = vsyncpa [#allocation10 + $0x1], 1 }
 0x118   :  { %725 = vsyncpa [#allocation5], 1 }
 0x119   :  { %727 = vsyncpa [#allocation5 + $0x1], 1 }

</bundles_post_ra>
